<compile_context>
chip_gen: v7x
topology: tpu7x:2x2x1
jax: 0.10.0
libtpu: 0.0.40
codegen_flags: <defaults>
</compile_context>

<pallas_src>
import jax
import jax.numpy as jnp
from jax.experimental import pallas as pl
from jax.experimental.pallas import tpu as pltpu


def _outconv_kernel(w_ref, b_ref, x_ref, o_ref):
    """w_ref: SMEM (Cout, Cin) f32, b_ref: SMEM (Cout,) f32,
    x_ref: VMEM (Cin, tr, 128), o_ref: VMEM (Cout, tr, 128)."""
    cin = x_ref.shape[0]
    cout = o_ref.shape[0]
    # Load each input channel exactly once; cast per strip (no full-tile f32
    # copy), accumulate in f32 with VPU scalar-broadcast FMAs.
    x0 = x_ref[0].astype(jnp.float32)                      # (tr, 128)
    accs = [x0 * w_ref[co, 0] + b_ref[co] for co in range(cout)]
    for ci in range(1, cin):
        xc = x_ref[ci].astype(jnp.float32)
        for co in range(cout):
            accs[co] = accs[co] + xc * w_ref[co, ci]
    # Dense, unmasked (tr, 128) store per output-channel slab.
    for co in range(cout):
        o_ref[co] = accs[co].astype(o_ref.dtype)


def _choose_row_tile(R, cin, cout, itemsize, n_batch, block_budget_bytes):
    """Row tile (in units of 128-lane rows) whose in+out block fits the budget."""
    # Sublane granularity that keeps tiles dense for f32 (8,128), bf16 (16,128)
    # and int8 (32,128) packing.
    sub = 8 if itemsize >= 4 else (16 if itemsize == 2 else 32)
    per_row = (cin + cout) * 128 * itemsize            # in+out bytes per lane-row
    max_tr = max(sub, (block_budget_bytes // per_row) // sub * sub)
    tr = R if R <= max_tr else max_tr
    # v7x has 2 TensorCores: guarantee >= 2 grid steps for single-image shapes,
    # as long as the sublane-alignment constraint can still be met.
    if n_batch == 1 and tr == R and R >= 2 * sub:
        tr = pl.cdiv(pl.cdiv(R, 2), sub) * sub
    return tr


def outconv_pallas(x, weight, bias, *, block_budget_bytes=8 << 20):
    """1x1x1 Conv3d (PyTorch OutConv forward).

    x:      (N, Cin, D, H, W)
    weight: (Cout, Cin, 1, 1, 1)   (PyTorch Conv3d layout)
    bias:   (Cout,)
    returns (N, Cout, D, H, W), same dtype as x.
    """
    N, Cin, D, H, W = x.shape
    Cout = weight.shape[0]
    S = D * H * W
    itemsize = jnp.dtype(x.dtype).itemsize

    # Free reshapes (row-major contiguous) -- no transposes.
    x3 = x.reshape(N, Cin, S)
    pad = (-S) % 128
    if pad:
        # Only for non-128-aligned spatial extents (e.g. 7x7x7); costs one
        # extra HBM pass but keeps every block lane-dense.
        x3 = jnp.pad(x3, ((0, 0), (0, 0), (0, pad)))
    S_pad = S + pad
    R = S_pad // 128
    x4 = x3.reshape(N, Cin, R, 128)

    w_mat = weight.reshape(Cout, Cin).astype(jnp.float32)   # SMEM scalars
    b_vec = bias.reshape(Cout).astype(jnp.float32)

    tr = _choose_row_tile(R, Cin, Cout, itemsize, N, block_budget_bytes)
    grid = (N, pl.cdiv(R, tr))

    # Honest VMEM footprint: double-buffered in+out blocks + f32 accumulator
    # staging + headroom.  Well under physical VMEM on v5e/v6e (128 MiB) and
    # v7x (64 MiB); explicitly raised above v5e's 16 MiB scoped default.
    in_block = Cin * tr * 128 * itemsize
    out_block = Cout * tr * 128 * itemsize
    vmem_need = 2 * (in_block + out_block) + Cout * tr * 128 * 4 + (4 << 20)
    vmem_limit = int(min(max(vmem_need, 16 << 20), 48 << 20))

    cost = pl.CostEstimate(
        flops=2 * N * S * Cin * Cout,
        transcendentals=0,
        bytes_accessed=N * S * (Cin + Cout) * itemsize + (Cout * Cin + Cout) * 4,
    )

    out4 = pl.pallas_call(
        _outconv_kernel,
        out_shape=jax.ShapeDtypeStruct((N, Cout, R, 128), x.dtype),
        grid_spec=pltpu.PrefetchScalarGridSpec(
            num_scalar_prefetch=0,
            grid=grid,
            in_specs=[
                pl.BlockSpec(memory_space=pltpu.MemorySpace.SMEM),     # weights
                pl.BlockSpec(memory_space=pltpu.MemorySpace.SMEM),     # bias
                pl.BlockSpec((None, Cin, tr, 128),
                             lambda n, r: (n, 0, r, 0)),               # x block
            ],
            out_specs=pl.BlockSpec((None, Cout, tr, 128),
                                   lambda n, r: (n, 0, r, 0)),
        ),
        compiler_params=pltpu.CompilerParams(
            dimension_semantics=("parallel", "parallel"),
            vmem_limit_bytes=vmem_limit),
        cost_estimate=cost,
    )(w_mat, b_vec, x4)

    out3 = out4.reshape(N, Cout, S_pad)
    if pad:
        out3 = out3[:, :, :S]
    return out3.reshape(N, Cout, D, H, W)


if __name__ == "__main__":
    # Small shapes consistent with a 3D U-Net output head.
    N, Cin, Cout, D, H, W = 2, 4, 3, 8, 8, 8

    key = jax.random.PRNGKey(0)
    kx, kw, kb = jax.random.split(key, 3)

    x = jax.random.normal(kx, (N, Cin, D, H, W), dtype=jnp.float32)

    # Deterministic PyTorch-style init: U(-k, k), k = 1/sqrt(Cin * 1*1*1).
    k = 1.0 / (Cin ** 0.5)
    weight = jax.random.uniform(kw, (Cout, Cin, 1, 1, 1),
                                minval=-k, maxval=k, dtype=jnp.float32)
    bias = jax.random.uniform(kb, (Cout,), minval=-k, maxval=k,
                              dtype=jnp.float32)

    out = jax.block_until_ready(outconv_pallas(x, weight, bias))

    # Reference check (pure JAX).
    ref = jnp.einsum("ncdhw,oc->nodhw", x, weight.reshape(Cout, Cin)) \
        + bias[None, :, None, None, None]
    assert out.shape == (N, Cout, D, H, W)
    assert jnp.allclose(out, ref, atol=1e-5, rtol=1e-5)

    print("KERNEL_OK")
</pallas_src>

<mosaic_0001>
module attributes {stable_mosaic.version = 11 : i64} {
  func.func @_outconv_kernel(%arg0: i32, %arg1: i32, %arg2: memref<3x4xf32, #tpu.memory_space<smem>>, %arg3: memref<3xf32, #tpu.memory_space<smem>>, %arg4: memref<1x4x4x128xf32, #tpu.memory_space<vmem>>, %arg5: memref<1x3x4x128xf32, #tpu.memory_space<vmem>>) attributes {dimension_semantics = [#tpu.dimension_semantics<parallel>, #tpu.dimension_semantics<parallel>], iteration_bounds = array<i64: 2, 1>, scalar_prefetch = 0 : i64, scratch_operands = 0 : i64, tpu.core_type = #tpu.core_type<tc>, window_params = [{transform_indices = @transform_0, window_bounds = array<i64: 3, 4>}, {transform_indices = @transform_1, window_bounds = array<i64: 3>}, {transform_indices = @transform_2, window_bounds = array<i64: 1, 4, 4, 128>}, {transform_indices = @transform_3, window_bounds = array<i64: 1, 3, 4, 128>}]} {
    %c0 = arith.constant 0 : index
    %c0_0 = arith.constant 0 : index
    %c0_1 = arith.constant 0 : index
    %c0_2 = arith.constant 0 : index
    %0 = vector.load %arg4[%c0, %c0_0, %c0_1, %c0_2] : memref<1x4x4x128xf32, #tpu.memory_space<vmem>>, vector<1x1x4x128xf32>
    %1 = vector.shape_cast %0 : vector<1x1x4x128xf32> to vector<4x128xf32>
    %c0_3 = arith.constant 0 : index
    %c0_4 = arith.constant 0 : index
    %2 = memref.load %arg2[%c0_3, %c0_4] : memref<3x4xf32, #tpu.memory_space<smem>>
    %3 = vector.broadcast %2 : f32 to vector<4x128xf32>
    %4 = arith.mulf %1, %3 : vector<4x128xf32>
    %c0_5 = arith.constant 0 : index
    %5 = memref.load %arg3[%c0_5] : memref<3xf32, #tpu.memory_space<smem>>
    %6 = vector.broadcast %5 : f32 to vector<4x128xf32>
    %7 = arith.addf %4, %6 : vector<4x128xf32>
    %c1 = arith.constant 1 : index
    %c0_6 = arith.constant 0 : index
    %8 = memref.load %arg2[%c1, %c0_6] : memref<3x4xf32, #tpu.memory_space<smem>>
    %9 = vector.broadcast %8 : f32 to vector<4x128xf32>
    %10 = arith.mulf %1, %9 : vector<4x128xf32>
    %c1_7 = arith.constant 1 : index
    %11 = memref.load %arg3[%c1_7] : memref<3xf32, #tpu.memory_space<smem>>
    %12 = vector.broadcast %11 : f32 to vector<4x128xf32>
    %13 = arith.addf %10, %12 : vector<4x128xf32>
    %c2 = arith.constant 2 : index
    %c0_8 = arith.constant 0 : index
    %14 = memref.load %arg2[%c2, %c0_8] : memref<3x4xf32, #tpu.memory_space<smem>>
    %15 = vector.broadcast %14 : f32 to vector<4x128xf32>
    %16 = arith.mulf %1, %15 : vector<4x128xf32>
    %c2_9 = arith.constant 2 : index
    %17 = memref.load %arg3[%c2_9] : memref<3xf32, #tpu.memory_space<smem>>
    %18 = vector.broadcast %17 : f32 to vector<4x128xf32>
    %19 = arith.addf %16, %18 : vector<4x128xf32>
    %c0_10 = arith.constant 0 : index
    %c1_11 = arith.constant 1 : index
    %c0_12 = arith.constant 0 : index
    %c0_13 = arith.constant 0 : index
    %20 = vector.load %arg4[%c0_10, %c1_11, %c0_12, %c0_13] : memref<1x4x4x128xf32, #tpu.memory_space<vmem>>, vector<1x1x4x128xf32>
    %21 = vector.shape_cast %20 : vector<1x1x4x128xf32> to vector<4x128xf32>
    %c0_14 = arith.constant 0 : index
    %c1_15 = arith.constant 1 : index
    %22 = memref.load %arg2[%c0_14, %c1_15] : memref<3x4xf32, #tpu.memory_space<smem>>
    %23 = vector.broadcast %22 : f32 to vector<4x128xf32>
    %24 = arith.mulf %21, %23 : vector<4x128xf32>
    %25 = arith.addf %7, %24 : vector<4x128xf32>
    %c1_16 = arith.constant 1 : index
    %c1_17 = arith.constant 1 : index
    %26 = memref.load %arg2[%c1_16, %c1_17] : memref<3x4xf32, #tpu.memory_space<smem>>
    %27 = vector.broadcast %26 : f32 to vector<4x128xf32>
    %28 = arith.mulf %21, %27 : vector<4x128xf32>
    %29 = arith.addf %13, %28 : vector<4x128xf32>
    %c2_18 = arith.constant 2 : index
    %c1_19 = arith.constant 1 : index
    %30 = memref.load %arg2[%c2_18, %c1_19] : memref<3x4xf32, #tpu.memory_space<smem>>
    %31 = vector.broadcast %30 : f32 to vector<4x128xf32>
    %32 = arith.mulf %21, %31 : vector<4x128xf32>
    %33 = arith.addf %19, %32 : vector<4x128xf32>
    %c0_20 = arith.constant 0 : index
    %c2_21 = arith.constant 2 : index
    %c0_22 = arith.constant 0 : index
    %c0_23 = arith.constant 0 : index
    %34 = vector.load %arg4[%c0_20, %c2_21, %c0_22, %c0_23] : memref<1x4x4x128xf32, #tpu.memory_space<vmem>>, vector<1x1x4x128xf32>
    %35 = vector.shape_cast %34 : vector<1x1x4x128xf32> to vector<4x128xf32>
    %c0_24 = arith.constant 0 : index
    %c2_25 = arith.constant 2 : index
    %36 = memref.load %arg2[%c0_24, %c2_25] : memref<3x4xf32, #tpu.memory_space<smem>>
    %37 = vector.broadcast %36 : f32 to vector<4x128xf32>
    %38 = arith.mulf %35, %37 : vector<4x128xf32>
    %39 = arith.addf %25, %38 : vector<4x128xf32>
    %c1_26 = arith.constant 1 : index
    %c2_27 = arith.constant 2 : index
    %40 = memref.load %arg2[%c1_26, %c2_27] : memref<3x4xf32, #tpu.memory_space<smem>>
    %41 = vector.broadcast %40 : f32 to vector<4x128xf32>
    %42 = arith.mulf %35, %41 : vector<4x128xf32>
    %43 = arith.addf %29, %42 : vector<4x128xf32>
    %c2_28 = arith.constant 2 : index
    %c2_29 = arith.constant 2 : index
    %44 = memref.load %arg2[%c2_28, %c2_29] : memref<3x4xf32, #tpu.memory_space<smem>>
    %45 = vector.broadcast %44 : f32 to vector<4x128xf32>
    %46 = arith.mulf %35, %45 : vector<4x128xf32>
    %47 = arith.addf %33, %46 : vector<4x128xf32>
    %c0_30 = arith.constant 0 : index
    %c3 = arith.constant 3 : index
    %c0_31 = arith.constant 0 : index
    %c0_32 = arith.constant 0 : index
    %48 = vector.load %arg4[%c0_30, %c3, %c0_31, %c0_32] : memref<1x4x4x128xf32, #tpu.memory_space<vmem>>, vector<1x1x4x128xf32>
    %49 = vector.shape_cast %48 : vector<1x1x4x128xf32> to vector<4x128xf32>
    %c0_33 = arith.constant 0 : index
    %c3_34 = arith.constant 3 : index
    %50 = memref.load %arg2[%c0_33, %c3_34] : memref<3x4xf32, #tpu.memory_space<smem>>
    %51 = vector.broadcast %50 : f32 to vector<4x128xf32>
    %52 = arith.mulf %49, %51 : vector<4x128xf32>
    %53 = arith.addf %39, %52 : vector<4x128xf32>
    %c1_35 = arith.constant 1 : index
    %c3_36 = arith.constant 3 : index
    %54 = memref.load %arg2[%c1_35, %c3_36] : memref<3x4xf32, #tpu.memory_space<smem>>
    %55 = vector.broadcast %54 : f32 to vector<4x128xf32>
    %56 = arith.mulf %49, %55 : vector<4x128xf32>
    %57 = arith.addf %43, %56 : vector<4x128xf32>
    %c2_37 = arith.constant 2 : index
    %c3_38 = arith.constant 3 : index
    %58 = memref.load %arg2[%c2_37, %c3_38] : memref<3x4xf32, #tpu.memory_space<smem>>
    %59 = vector.broadcast %58 : f32 to vector<4x128xf32>
    %60 = arith.mulf %49, %59 : vector<4x128xf32>
    %61 = arith.addf %47, %60 : vector<4x128xf32>
    %c0_39 = arith.constant 0 : index
    %c0_40 = arith.constant 0 : index
    %c0_41 = arith.constant 0 : index
    %c0_42 = arith.constant 0 : index
    %62 = vector.load %arg5[%c0_39, %c0_40, %c0_41, %c0_42] : memref<1x3x4x128xf32, #tpu.memory_space<vmem>>, vector<1x1x4x128xf32>
    %63 = vector.shape_cast %62 : vector<1x1x4x128xf32> to vector<4x128xf32>
    %64 = vector.shape_cast %53 : vector<4x128xf32> to vector<1x1x4x128xf32>
    tpu.vector_store %arg5[%c0_39, %c0_40, %c0_41, %c0_42], %64 {strides = array<i32>} : memref<1x3x4x128xf32, #tpu.memory_space<vmem>>, vector<1x1x4x128xf32>,
    %c0_43 = arith.constant 0 : index
    %c1_44 = arith.constant 1 : index
    %c0_45 = arith.constant 0 : index
    %c0_46 = arith.constant 0 : index
    %65 = vector.load %arg5[%c0_43, %c1_44, %c0_45, %c0_46] : memref<1x3x4x128xf32, #tpu.memory_space<vmem>>, vector<1x1x4x128xf32>
    %66 = vector.shape_cast %65 : vector<1x1x4x128xf32> to vector<4x128xf32>
    %67 = vector.shape_cast %57 : vector<4x128xf32> to vector<1x1x4x128xf32>
    tpu.vector_store %arg5[%c0_43, %c1_44, %c0_45, %c0_46], %67 {strides = array<i32>} : memref<1x3x4x128xf32, #tpu.memory_space<vmem>>, vector<1x1x4x128xf32>,
    %c0_47 = arith.constant 0 : index
    %c2_48 = arith.constant 2 : index
    %c0_49 = arith.constant 0 : index
    %c0_50 = arith.constant 0 : index
    %68 = vector.load %arg5[%c0_47, %c2_48, %c0_49, %c0_50] : memref<1x3x4x128xf32, #tpu.memory_space<vmem>>, vector<1x1x4x128xf32>
    %69 = vector.shape_cast %68 : vector<1x1x4x128xf32> to vector<4x128xf32>
    %70 = vector.shape_cast %61 : vector<4x128xf32> to vector<1x1x4x128xf32>
    tpu.vector_store %arg5[%c0_47, %c2_48, %c0_49, %c0_50], %70 {strides = array<i32>} : memref<1x3x4x128xf32, #tpu.memory_space<vmem>>, vector<1x1x4x128xf32>,
    return
  }
  func.func @transform_0(%arg0: i32, %arg1: i32) -> (i32, i32) {
    %c0_i32 = arith.constant 0 : i32
    %c0_i32_0 = arith.constant 0 : i32
    %c0_i32_1 = arith.constant 0 : i32
    return %c0_i32, %c0_i32_0 : i32, i32
  }
  func.func @transform_1(%arg0: i32, %arg1: i32) -> i32 {
    %c0_i32 = arith.constant 0 : i32
    %c0_i32_0 = arith.constant 0 : i32
    return %c0_i32 : i32
  }
  func.func @transform_2(%arg0: i32, %arg1: i32) -> (i32, i32, i32, i32) {
    %c0_i32 = arith.constant 0 : i32
    %c0_i32_0 = arith.constant 0 : i32
    %c0_i32_1 = arith.constant 0 : i32
    return %arg0, %c0_i32, %arg1, %c0_i32_0 : i32, i32, i32, i32
  }
  func.func @transform_3(%arg0: i32, %arg1: i32) -> (i32, i32, i32, i32) {
    %c0_i32 = arith.constant 0 : i32
    %c0_i32_0 = arith.constant 0 : i32
    %c0_i32_1 = arith.constant 0 : i32
    return %arg0, %c0_i32, %arg1, %c0_i32_0 : i32, i32, i32, i32
  }
}

</mosaic_0001>

<bundles_post_ra>
// kernel: tpu_custom_call.1
= control target key start
LH: loop header
LB: loop body
LE: loop exit
PB: predicated region body
PF: predicated region fallthrough
CT: control target
= control target key end

     0   :  { %8 = vsyncpa [#allocation5], 0  ;;  %s958_s0 = inlined_call_operand.hbm [shape: f32[3,4], index: 0, kind: input, shape index: {}]   ;;  %s959_s1 = inlined_call_operand.vmem [shape: f32[3], index: 1, kind: input, shape index: {}]   ;;  %s960_s2 = inlined_call_operand.hbm [shape: f32[2,4,4,128], index: 2, kind: input, shape index: {}]   ;;  %s961_s3 = inlined_call_operand.hbm [shape: f32[2,3,4,128], index: 3, kind: output, shape index: {}]  }
   0x1   :  { %9 = vsyncpa [#allocation6], 0 }
   0x2   :  { %10 = vsyncpa [#allocation3], 0 }
   0x3   :  { %12 = vsyncpa [#allocation3 + $0x1], 0 }
   0x4   :  { %13 = vsyncpa [#allocation4], 0 }
   0x5   :  { %15 = vsyncpa [#allocation4 + $0x1], 0  ;;  %s723_s12 = smov 0   ;;  %s725_s13 = smov 0  }
   0x6   :  { %s727_s14 = smov 0   ;;  %s729_s15 = smov 0  }
   0x7   :  { %s731_s16 = smov 0   ;;  %s733_s17 = smov 0  }
   0x8 LB: > { %s421_s18 = sadd.s32 4294967295, %s693_s17   ;;  %s422_s19 = sadd.s32 4294967294, %s693_s17   ;;  %s693_s17 = sphi %s733_s17, %s21_s17   ;;  %s689_s16 = sphi %s731_s16, %s982_s16   ;;  %s685_s15 = sphi %s729_s15, %s981_s15   ;;  %s681_s14 = sphi %s727_s14, %s980_s14   ;;  %s677_s13 = sphi %s725_s13, %s979_s13   ;;  %s673_s12 = sphi %s723_s12, %s978_s12  }
   0x9   : > { %s84_s20 = sadd.s32 1, %s681_s14  ;;  %p91_p0 = scmp.ne.s32.totalorder %s681_s14, %s677_s13 }
   0xa   : > { %p92_p1 = scmp.eq.s32.totalorder %s693_s17, 0  ;;  %p97_p2 = scmp.ne.s32.totalorder %s677_s13, %s673_s12 }
   0xb   : > { %p761_p3 = scmp.eq.s32.totalorder %s421_s18, 0  ;;  %p123_p4 = scmp.eq.s32.totalorder %s421_s18, 1 }
   0xc   : > { %p93_p5 = por %p92_p1, %p91_p0  ;;  %p129_p6 = scmp.eq.s32.totalorder %s422_s19, 1 }
   0xd   : > { %s966_s21 = scalar_select %p761_p3, 1, 0 }
   0xe   : > { %p767_p7 = por %p761_p3, %p97_p2  ;;  %p771_p8 = por %p123_p4, %p91_p0 }
   0xf   : > { %p775_p9 = por %p129_p6, %p97_p2  ;;  %p423_p10 = scmp.ge.s32.totalorder %s693_s17, 1 }
  0x10   : > { %s967_s22 = scalar_select %p767_p7, 1, 0 }
  0x11   : > { %s968_s23 = scalar_select %p771_p8, 1, 0 }
  0x12   : > { %s969_s24 = scalar_select %p775_p9, 1, 0 }
  0x13   : > { %p136_p11 = scmp.lt.s32.totalorder %s693_s17, 3  ;;  %p487_p1 = scmp.lt.s32.totalorder %s693_s17, 2 }
  0x14   : > { %s158_s28 = sshll.u32 %s959_s1, 4  ;;  %s169_s4 = sand.u32 1, %s681_s14   ;;  %s159_s28 = int_to_ptr.vmem [resolvable:$true] %s158_s28 }
  0x15   : > { %p782_p13 = pnand %p423_p10, %p136_p11  ;;  %p792_p4 = pnand %p487_p1, %p93_p5 }
  0x16   : > { %s33_s5 = sadd.s32 1, %s689_s16  ;;  %s545_s8 = scalar_lea.hbm %s958_s0, 64 }
  0x17   : > { %p470_p0 = pneg %p782_p13  ;;  %p546_p5 = scmp.ne.s32.totalorder %s958_s0, %s545_s8 }
  0x18   : > { %p552_p1 = scmp.lt.u32.totalorder %s545_s8, %s958_s0 }
  0x19   : > { %p798_p2 = pnand %p470_p0, %p761_p3 }
  0x1b   : > { %p547_p6 = pneg %p798_p2 }
  0x1d   : > { %p548_p10 = pnand %p547_p6, %p546_p5 }
  0x1f   : > { %p549_p11 = pneg %p548_p10 }
  0x21   : > { %p554_p0 = pnand %p552_p1, %p549_p11 }
  0x23   : > { %557 = shalt.err (!%p554_p0)
}
  0x24   : > { %s695_s19 = smov [#allocation2]   ;;  %s558_s6 = scalar_lea.vmem %s159_s28, 16 }
  0x25   : > { %473 = dma.hbm_to_smem (!%p798_p2), %s958_s0, 64, %s695_s19, [#allocation5]  }
  0x26   : > { %p559_p12 = scmp.ne.s32.totalorder %s159_s28, %s558_s6  ;;  %p566_p7 = scmp.lt.s32.totalorder %s159_s28, %s159_s28 }
  0x27   : > { %p567_p5 = scmp.lt.s32.totalorder %s558_s6, %s558_s6 }
  0x28   : > { %p561_p9 = pnand %p559_p12, %p547_p6 }
  0x29   : > { %p568_p10 = por %p567_p5, %p566_p7 }
  0x2a   : > { %p562_p8 = pneg %p561_p9 }
  0x2c   : > { %p569_p3 = pnand %p568_p10, %p562_p8 }
  0x2e   : > { %572 = shalt.err (!%p569_p3)
}
  0x2f   : > { %s696_s7 = smov [#allocation7]   ;;  %p35_p11 = scmp.ge.s32.totalorder %s33_s5, 2 }
  0x30   : > { %476 = dma.vmem_to_smem (!%p798_p2), %s159_s28, 16, %s696_s7, [#allocation6]  }
  0x31   : > { %s427_s8 = sshll.u32 %s169_s4, 4  ;;  %s455_s9 = sshll.u32 %s689_s16, 8 }
  0x32   : > { %s984_s5 = smov (%p35_p11, %s33_s5), 0  ;;  %s830_s30 = scalar_lea.hbm %s960_s2, %s455_s9 }
  0x33   : > { %s79_s18 = ssub.s32 %s689_s16, %s984_s5  ;;  %s173_s19 = scalar_lea.vmem [#allocation8], %s427_s8 }
  0x34   : > { %s181_s28 = sshll.u32 %s173_s19, 4  ;;  %p82_p3 = scmp.eq.s32.totalorder %s79_s18, 0  ;;  %s834_s28 = int_to_ptr.vmem [resolvable:$true] %s181_s28 }
  0x35   : > { %s843_s27 = scalar_lea.sflag [#allocation3], %s169_s4  ;;  %s573_s6 = scalar_lea.hbm %s830_s30, 256 }
  0x36   : > { %s839_s26 = scalar_select %p82_p3, %s681_s14, %s84_s20  }
  0x37   : > { %p574_p7 = scmp.ne.s32.totalorder %s830_s30, %s573_s6  ;;  %p575_p8 = pneg %p792_p4 }
  0x38   : > { %s578_s9 = scalar_lea.hbm %s960_s2, 512  ;;  %p579_p2 = scmp.lt.u32.totalorder %s830_s30, %s960_s2 }
  0x39   : > { %p576_p9 = pnand %p575_p8, %p574_p7  ;;  %p580_p6 = scmp.lt.u32.totalorder %s578_s9, %s573_s6 }
  0x3a   : > { %p582_p0 = scmp.lt.u32.totalorder %s573_s6, %s830_s30 }
  0x3b   : > { %p577_p12 = pneg %p576_p9  ;;  %p581_p1 = por %p580_p6, %p579_p2 }
  0x3d   : > { %p583_p5 = por %p582_p0, %p581_p1 }
  0x3f   : > { %p584_p10 = pnand %p583_p5, %p577_p12 }
  0x41   : > { %587 = shalt.err (!%p584_p10)
}
  0x42   : > { %s588_s20 = scalar_lea.vmem %s834_s28, 256  ;;  %s697_s4 = smov [#allocation8]  }
  0x43   : > { %p589_p11 = scmp.ne.s32.totalorder %s834_s28, %s588_s20  ;;  %s593_s18 = sshll.u32 %s697_s4, 4  ;;  %s594_s18 = int_to_ptr.vmem [resolvable:$false] %s593_s18 }
  0x44   : > { %s595_s19 = scalar_lea.vmem %s594_s18, 512  ;;  %p596_p9 = scmp.lt.s32.totalorder %s834_s28, %s594_s18 }
  0x45   : > { %p591_p3 = pnand %p589_p11, %p575_p8  ;;  %p597_p2 = scmp.lt.s32.totalorder %s595_s19, %s588_s20 }
  0x47   : > { %p592_p7 = pneg %p591_p3  ;;  %p598_p6 = por %p597_p2, %p596_p9 }
  0x49   : > { %p599_p1 = pnand %p598_p6, %p592_p7 }
  0x4b   : > { %602 = shalt.err (!%p599_p1)
}
  0x4c   : > { %s698_s6 = smov 64   ;;  %s699_s7 = smov 4  }
  0x4d   : > { %480 = dma.hbm_to_vmem [thread:$0]  (!%p792_p4), %s830_s30, 256, %s834_s28, %s843_s27, %s698_s6, %s698_s6, %s699_s7  }
  0x4e   : > { %193 = sbr.rel (%p782_p13) target bundleno = 132 (0x84), region = 32  ;;  %p973_p8 = scmp.ne.s32.totalorder (!%p782_p13), %s966_s21, 0 }
  0x55   : > { %656 = dma.done.wait (%p973_p8), [#allocation5], 64  }
  0x56   : > { %658 = vsyncadd (%p973_p8), [#allocation5], 4294967232 }
  0x57   : > { %660 = dma.done.wait (%p973_p8), [#allocation6], 16  }
  0x58   : > { %662 = vsyncadd (%p973_p8), [#allocation6], 4294967280  ;;  %s882_s8 = sand.u32 1, %s677_s13   ;;  %p974_p13 = scmp.ne.s32.totalorder %s967_s22, 0 }
  0x59   : > { %s433_s25 = sshll.u32 %s882_s8, 4  ;;  %s204_s29 = scalar_lea.sflag [#allocation3], %s882_s8 }
  0x5a   : > { %s207_s30 = scalar_lea.vmem [#allocation8], %s433_s25 }
  0x5b   : > { %664 = dma.done.wait (%p974_p13), %s204_s29, 256  }
  0x5c   : > { %666 = vsyncadd (%p974_p13), %s204_s29, 4294967040 }
  0x5d   : > { %212 = sfence }
  0x5e   : > { %s232_s28 = sld [smem:[#allocation2]]  ;;  %s439_s9 = sld [smem:[#allocation2 + $0x1]]  ;;  %v231_v0 = vld [vmem:[%s207_s30] sm:$0xf]  ;;  %v438_v1 = vld [vmem:[%s207_s30 + $0x4] sm:$0xf] }
  0x5f   : > { %s235_s27 = sld [smem:[#allocation7]]  ;;  %s443_s21 = sld [smem:[#allocation2 + $0x2]]  ;;  %v442_v3 = vld [vmem:[%s207_s30 + $0x8] sm:$0xf]  ;;  %v446_v7 = vld [vmem:[%s207_s30 + $0xc] sm:$0xf] }
  0x60   : > { %s447_s10 = sld [smem:[#allocation2 + $0x3]]  ;;  %s434_s11 = sld [smem:[#allocation2 + $0x80]] }
  0x61   : > { %s890_s20 = sld [smem:[#allocation7 + $0x1]]  ;;  %s444_s18 = sld [smem:[#allocation2 + $0x82]] }
  0x62   : > { %s440_s4 = sld [smem:[#allocation2 + $0x81]]  ;;  %s448_s19 = sld [smem:[#allocation2 + $0x83]] }
  0x63   : > { %s436_s22 = sld [smem:[#allocation2 + $0x100]]  ;;  %s892_s6 = sld [smem:[#allocation7 + $0x2]] }
  0x64   : > { %v233_v2 = vstv %s232_s28  ;;  %v253_v6 = vstv %s439_s9  ;;  %s441_s7 = sld [smem:[#allocation2 + $0x101]]  ;;  %s894_s25 = sld [smem:[#allocation2 + $0x102]] }
  0x65   : > { %v234_v4 = vmul.f32 %v233_v2, %v231_v0  ;;  %v236_v5 = vstv %s235_s27  ;;  %v254_v8 = vmul.f32 %v438_v1, %v253_v6  ;;  %v267_v9 = vstv %s443_s21  ;;  %s896_s29 = sld [smem:[#allocation2 + $0x103]]  ;;  %s456_s28 = smul.u32 12, %s882_s8 }
  0x66   : > { %v268_v11 = vmul.f32 %v442_v3, %v267_v9  ;;  %v281_v12 = vstv %s447_s10  ;;  %v239_v14 = vstv %s434_s11  ;;  %s457_s9 = smul.u32 192, %s685_s15  ;;  %p975_p12 = scmp.ne.s32.totalorder %s968_s23, 0 }
  0x67   : > { %v237_v10 = vadd.f32 %v236_v5, %v234_v4  ;;  %v282_v13 = vmul.f32 %v446_v7, %v281_v12  ;;  %v240_v16 = vmul.f32 %v239_v14, %v231_v0  ;;  %v242_v17 = vstv %s890_s20  ;;  %s230_s30 = scalar_lea.vmem [#allocation9], %s456_s28  ;;  %s298_s20 = scalar_lea.sflag [#allocation4], %s882_s8 }
  0x68   : > { %v257_v18 = vstv %s440_s4  ;;  %v271_v20 = vstv %s444_s18  ;;  %v285_v21 = vstv %s448_s19  ;;  %s312_s27 = sshll.u32 %s230_s30, 4  ;;  %s909_s11 = scalar_lea.hbm %s961_s3, %s457_s9  ;;  %s904_s27 = int_to_ptr.vmem [resolvable:$true] %s312_s27 }
  0x69   : > { %v255_v15 = vadd.f32 %v254_v8, %v237_v10  ;;  %v258_v19 = vmul.f32 %v438_v1, %v257_v18  ;;  %v243_v23 = vadd.f32 %v242_v17, %v240_v16  ;;  %v272_v24 = vmul.f32 %v442_v3, %v271_v20  ;;  %s603_s4 = scalar_lea.vmem %s904_s27, 192  ;;  %s700_s15 = smov [#allocation9]  }
  0x6a   : > { %v286_v25 = vmul.f32 %v446_v7, %v285_v21  ;;  %v245_v26 = vstv %s436_s22  ;;  %v248_v27 = vstv %s892_s6  ;;  %v261_v28 = vstv %s441_s7  ;;  %p604_p4 = scmp.ne.s32.totalorder %s904_s27, %s603_s4  ;;  %s607_s18 = sshll.u32 %s700_s15, 4  ;;  %s608_s18 = int_to_ptr.vmem [resolvable:$false] %s607_s18 }
  0x6b   : > { %v269_v22 = vadd.f32 %v268_v11, %v255_v15  ;;  %v275_v29 = vstv %s894_s25  ;;  %v259_v31 = vadd.f32 %v258_v19, %v243_v23  ;;  %v246_v32 = vmul.f32 %v245_v26, %v231_v0  ;;  %s609_s19 = scalar_lea.vmem %s608_s18, 384  ;;  %p610_p10 = scmp.lt.s32.totalorder %s904_s27, %s608_s18 }
  0x6c   : > { %v262_v33 = vmul.f32 %v438_v1, %v261_v28  ;;  %v289_v34 = vstv %s896_s29  ;;  %v276_v37 = vmul.f32 %v442_v3, %v275_v29  ;;  %p605_p0 = pnand %p604_p4, %p975_p12  ;;  %p611_p11 = scmp.lt.s32.totalorder %s609_s19, %s603_s4 }
  0x6d   : > { %v283_v30 = vadd.f32 %v282_v13, %v269_v22  ;;  %v273_v35 = vadd.f32 %v272_v24, %v259_v31  ;;  %v249_v36 = vadd.f32 %v248_v27, %v246_v32  ;;  %v290_v40 = vmul.f32 %v446_v7, %v289_v34 }
  0x6e   : > { %p606_p5 = pneg %p605_p0  ;;  %p612_p3 = por %p611_p11, %p610_p10 }
  0x6f   : > { %292 = vst [vmem:[%s230_s30] sm:$0xf] %v283_v30  ;;  %v287_v38 = vadd.f32 %v286_v25, %v273_v35  ;;  %v263_v39 = vadd.f32 %v262_v33, %v249_v36 }
  0x70   : > { %p613_p7 = pnand %p612_p3, %p606_p5 }
  0x71   : > { %450 = vst [vmem:[%s230_s30 + $0x4] sm:$0xf] %v287_v38  ;;  %v277_v41 = vadd.f32 %v276_v37, %v263_v39 }
  0x73   : > { %v291_v42 = vadd.f32 %v290_v40, %v277_v41 }
  0x75   : > { %451 = vst [vmem:[%s230_s30 + $0x8] sm:$0xf] %v291_v42 }
  0x76   : > { %616 = shalt.err (!%p613_p7)
}
  0x77   : > { %s617_s22 = scalar_lea.hbm %s909_s11, 192  ;;  %s621_s25 = scalar_lea.hbm %s961_s3, 384 }
  0x78   : > { %p618_p9 = scmp.ne.s32.totalorder %s909_s11, %s617_s22  ;;  %p622_p1 = scmp.lt.u32.totalorder %s909_s11, %s961_s3 }
  0x79   : > { %p623_p8 = scmp.lt.u32.totalorder %s621_s25, %s617_s22  ;;  %p625_p4 = scmp.lt.u32.totalorder %s617_s22, %s909_s11 }
  0x7a   : > { %p619_p2 = pnand %p618_p9, %p975_p12 }
  0x7b   : > { %p624_p13 = por %p623_p8, %p622_p1 }
  0x7c   : > { %p620_p6 = pneg %p619_p2 }
  0x7d   : > { %p626_p0 = por %p625_p4, %p624_p13 }
  0x7f   : > { %p627_p5 = pnand %p626_p0, %p620_p6 }
  0x81   : > { %630 = shalt.err (!%p627_p5)
}
  0x82   : > { %s701_s30 = smov 64   ;;  %s702_s9 = smov 4  }
  0x83   : > { %468 = dma.vmem_to_hbm [thread:$0]  (%p975_p12), %s904_s27, 192, %s909_s11, %s298_s20, %s701_s30, %s701_s30, %s702_s9  }
  0x84 PF: > { %s327_s21 = sand.u32 1, %s673_s12   ;;  %p976_p10 = scmp.ne.s32.totalorder %s969_s24, 0 }
  0x85   : > { %p977_p11 = scmp.ge.s32.totalorder %s693_s17, 2  ;;  %s328_s10 = scalar_lea.sflag [#allocation4], %s327_s21 }
  0x87   : > { %p482_p3 = pnand %p977_p11, %p976_p10 }
  0x89   : > { %668 = dma.done.wait (!%p482_p3), %s328_s10, 192  }
  0x8a   : > { %670 = vsyncadd (!%p482_p3), %s328_s10, 4294967104  ;;  %s21_s17 = sadd.s32 1, %s693_s17   ;;  %s978_s12 = smov %s677_s13 }
  0x8b   : > { %p18_p7 = scmp.ge.s32.totalorder %s21_s17, 4   ;;  %s979_s13 = smov %s681_s14 }
  0x8c   : > { %s980_s14 = smov %s839_s26  ;;  %s981_s15 = smov %s689_s16 }
  0x8d   : > { %s982_s16 = smov %s984_s5  ;;  %20 = sbr.rel (!%p18_p7) target bundleno = 8 (0x8), region = 92 }
  0x94   :  { %333 = vsyncpa [#allocation3], 1 }
  0x95   :  { %335 = vsyncpa [#allocation3 + $0x1], 1 }
  0x96   :  { %336 = vsyncpa [#allocation4], 1 }
  0x97   :  { %338 = vsyncpa [#allocation4 + $0x1], 1 }
  0x98   :  { %339 = vsyncpa [#allocation5], 1 }
  0x99   :  { %341 = vsyncpa [#allocation5 + $0x1], 1 }
  0x9a   :  { %342 = vsyncpa [#allocation6], 1 }
  0x9b   :  { %344 = vsyncpa [#allocation6 + $0x1], 1 }

</bundles_post_ra>
